<compile_context>
chip_gen: v6e
topology: v6e:2x2x1
jax: 0.10.0
libtpu: 0.0.40
codegen_flags: <defaults>
</compile_context>

<pallas_src>
import jax
import jax.numpy as jnp
from jax.experimental import pallas as pl
from jax.experimental.pallas import tpu as pltpu


def fused_rnn_kernel(x_ref, h0_ref, *refs):
    """All RNN(tanh, bias=False) layers + fused Linear(hidden, 1) projection.

    Everything is hidden-on-sublanes / batch-on-lanes.  Per batch tile:
      x_ref   : (seq, input_dim, B)                 time-major layer-0 input
      h0_ref  : (num_layers, hidden, B)             initial hidden states
      refs    : w_ih[0..L-1]  (hidden, d_in_l)      PyTorch layout, used as-is
                w_hh[0..L-1]  (hidden, hidden)
                w_out         (1, hidden)
                out_ref       (seq, B)              projected output (time-major)
                hn_ref        (num_layers, hidden, B)  final hidden states
    """
    seq = x_ref.shape[0]
    num_layers = h0_ref.shape[0]

    wih_refs = refs[:num_layers]
    whh_refs = refs[num_layers:2 * num_layers]
    wout_ref = refs[2 * num_layers]
    out_ref = refs[2 * num_layers + 1]
    hn_ref = refs[2 * num_layers + 2]

    # Tiny weights: read once, hoisted out of the time loop.
    wih = [wih_refs[l][...] for l in range(num_layers)]
    whh = [whh_refs[l][...] for l in range(num_layers)]
    wout = wout_ref[...]                           # (1, hidden)

    # Time-outer / layer-inner recurrence: only `num_layers` hidden states are
    # live at any point (no (seq, hidden, B) intermediate, no jnp.stack), and
    # each per-step output row is stored lane-dense as soon as it is produced.
    # TODO(synk): for long sequences switch to lax.fori_loop with the carry in
    # a small VMEM scratch instead of fully unrolling the time loop.
    h = [h0_ref[l] for l in range(num_layers)]     # each (hidden, B)
    for t in range(seq):                           # static, fully unrolled
        inp = x_ref[t]                             # (d_in, B) then (hidden, B)
        for l in range(num_layers):
            pre = (jnp.dot(wih[l], inp, preferred_element_type=jnp.float32)
                   + jnp.dot(whh[l], h[l], preferred_element_type=jnp.float32))
            h[l] = jnp.tanh(pre)
            inp = h[l]
        # Linear(hidden, 1, bias=False): (1,H) @ (H,B) -> (1,B); lands directly
        # in the lane-dense (seq, B) output layout.
        out_ref[pl.ds(t, 1), :] = jnp.dot(
            wout, inp, preferred_element_type=jnp.float32)

    for l in range(num_layers):
        hn_ref[l] = h[l]                           # lane-dense (hidden, B) store


def _round_up(x, m):
    return ((x + m - 1) // m) * m


def _choose_tiling(batch, max_tile=2048):
    """Pad n_params to a lane multiple and pick (padded_batch, batch_tile).

    Big tiles (cap `max_tile`) amortize the ~0.35us per-grid-step overhead;
    an even tile count keeps both v7x TensorCores busy on the "parallel" axis
    (single-TC v5e/v6e just see fewer grid steps).
    """
    padded = _round_up(batch, 128)
    if padded <= 128:
        return 128, 128                            # single tile, grid of 1
    if padded <= 2 * max_tile:
        padded = _round_up(padded, 256)
        return padded, padded // 2                 # grid of exactly 2
    padded = _round_up(padded, 2 * max_tile)
    return padded, max_tile                        # even grid of big tiles


def _vmem_limit_bytes(seq, input_dim, hidden, num_layers, b_tile, wih, whh):
    """Explicit scoped-VMEM budget: double-buffered blocks + value headroom."""
    item = 4
    x_blk = seq * input_dim * b_tile * item
    h_blk = num_layers * hidden * b_tile * item
    out_blk = seq * b_tile * item
    w_bytes = (sum(int(w.size) for w in wih)
               + sum(int(w.size) for w in whh) + hidden) * item
    need = 2 * (x_blk + 2 * h_blk + out_blk + w_bytes) + 4 * h_blk
    # At least v5e's 16 MiB default; well under v7x's 64 MiB physical VMEM.
    return int(min(48 << 20, max(16 << 20, 2 * need)))


def meta_optimizer_rnn_forward(x, h0, w_ih_list, w_hh_list, w_out, *,
                               b_tile=None, transposed_state=False):
    """Forward pass of MetaOptimizerRNN.

    x  : (batch, seq, input_dim)  batch-first, as in the PyTorch module.
    h0 : (num_layers, batch, hidden), or (num_layers, hidden, batch) when
         transposed_state=True.  Keeping self.h0 persistently in the
         transposed layout avoids all per-call state transposes.
    Weights are in PyTorch layout (w_ih: (H, d_in), w_hh: (H, H), w_out: (1, H))
    and are consumed as-is by the batch-on-lanes kernel.
    Returns (o1.squeeze(), hn) with hn in the same layout as h0.
    """
    x = jnp.asarray(x, jnp.float32)
    w_out = jnp.asarray(w_out, jnp.float32)
    wih = [jnp.asarray(w, jnp.float32) for w in w_ih_list]
    whh = [jnp.asarray(w, jnp.float32) for w in w_hh_list]

    batch, seq, input_dim = x.shape
    h0 = jnp.asarray(h0, jnp.float32)
    if transposed_state:
        num_layers, hidden, _ = h0.shape
        h0_t = h0
    else:
        num_layers, _, hidden = h0.shape
        h0_t = jnp.transpose(h0, (0, 2, 1))        # (L, hidden, batch)

    # Batch (= n_params) lives on lanes: pad to a lane multiple and tile it.
    if b_tile is None:
        padded, b_tile = _choose_tiling(batch)
    else:
        assert b_tile % 128 == 0, b_tile
        padded = _round_up(batch, b_tile)
    grid = (padded // b_tile,)

    # Single wrapper-side relayout to time-major / batch-on-lanes.
    x_t = jnp.transpose(x, (1, 2, 0))              # (seq, d_in, batch)
    if padded != batch:
        pad = padded - batch
        x_t = jnp.pad(x_t, ((0, 0), (0, 0), (0, pad)))
        h0_t = jnp.pad(h0_t, ((0, 0), (0, 0), (0, pad)))

    in_specs = [
        pl.BlockSpec((seq, input_dim, b_tile), lambda b: (0, 0, b)),
        pl.BlockSpec((num_layers, hidden, b_tile), lambda b: (0, 0, b)),
    ]
    for w in wih + whh + [w_out]:                  # tiny weights: whole-array
        in_specs.append(pl.BlockSpec(w.shape, lambda b: (0, 0)))

    out_specs = (
        pl.BlockSpec((seq, b_tile), lambda b: (0, b)),                 # lane-dense
        pl.BlockSpec((num_layers, hidden, b_tile), lambda b: (0, 0, b)),
    )
    out_shape = (
        jax.ShapeDtypeStruct((seq, padded), jnp.float32),
        jax.ShapeDtypeStruct((num_layers, hidden, padded), jnp.float32),
    )

    out_tm, hn_t = pl.pallas_call(
        fused_rnn_kernel,
        grid=grid,
        in_specs=in_specs,
        out_specs=out_specs,
        out_shape=out_shape,
        compiler_params=pltpu.CompilerParams(
            dimension_semantics=("parallel",),
            vmem_limit_bytes=_vmem_limit_bytes(
                seq, input_dim, hidden, num_layers, b_tile, wih, whh)),
    )(x_t, h0_t, *wih, *whh, w_out)

    out_tm = out_tm[:, :batch]                     # drop batch padding
    hn_t = hn_t[:, :, :batch]

    o1 = jnp.transpose(out_tm, (1, 0))[..., None]  # (batch, seq, 1) = outputer(output1)
    hn = hn_t if transposed_state else jnp.transpose(hn_t, (0, 2, 1))
    return jnp.squeeze(o1), hn


def forward_reference(x, h0, w_ih_list, w_hh_list, w_out):
    """Pure-JAX reference (PyTorch weight/state layouts) for the same forward."""
    num_layers = h0.shape[0]
    seq = x.shape[1]
    layer_in = x
    hn = []
    for l in range(num_layers):
        h = h0[l]
        outs = []
        for t in range(seq):
            h = jnp.tanh(layer_in[:, t, :] @ w_ih_list[l].T + h @ w_hh_list[l].T)
            outs.append(h)
        layer_in = jnp.stack(outs, axis=1)
        hn.append(h)
    o1 = layer_in @ w_out.T                        # (batch, seq, 1)
    return jnp.squeeze(o1), jnp.stack(hn, axis=0)


if __name__ == "__main__":
    def make_case(key, batch, seq, input_dim, hidden, num_layers, zero_h0):
        kx, kih, khh, kout, kh = jax.random.split(key, 5)
        x = jax.random.normal(kx, (batch, seq, input_dim), dtype=jnp.float32)
        bound = 1.0 / float(hidden) ** 0.5         # nn.RNN default init, bias=False
        kih_keys = jax.random.split(kih, num_layers)
        khh_keys = jax.random.split(khh, num_layers)
        w_ih, w_hh = [], []
        for l in range(num_layers):
            d_in = input_dim if l == 0 else hidden
            w_ih.append(jax.random.uniform(kih_keys[l], (hidden, d_in),
                                           jnp.float32, -bound, bound))
            w_hh.append(jax.random.uniform(khh_keys[l], (hidden, hidden),
                                           jnp.float32, -bound, bound))
        # nn.Linear(hidden, 1, bias=False), weight scaled by 0.1 in __init__.
        w_out = 0.1 * jax.random.uniform(kout, (1, hidden), jnp.float32, -bound, bound)
        if zero_h0:
            h0 = jnp.zeros((num_layers, batch, hidden), jnp.float32)
        else:
            h0 = 0.1 * jax.random.normal(kh, (num_layers, batch, hidden), jnp.float32)
        return x, h0, w_ih, w_hh, w_out

    key = jax.random.PRNGKey(0)
    k1, k2, k3 = jax.random.split(key, 3)

    # Case 1: small batch (exercises batch padding 8 -> 128, grid of 1).
    x, h0, w_ih, w_hh, w_out = make_case(k1, batch=8, seq=8, input_dim=4,
                                         hidden=32, num_layers=1, zero_h0=True)
    out, hn = meta_optimizer_rnn_forward(x, h0, w_ih, w_hh, w_out)
    out = jax.block_until_ready(out)
    hn = jax.block_until_ready(hn)
    out_ref, hn_ref = forward_reference(x, h0, w_ih, w_hh, w_out)
    assert out.shape == out_ref.shape, (out.shape, out_ref.shape)
    assert jnp.allclose(out, out_ref, atol=1e-4, rtol=1e-4)
    assert jnp.allclose(hn, hn_ref, atol=1e-4, rtol=1e-4)

    # Case 2: multi-layer + explicit batch tile (2 parallel tiles of 128 rows).
    x2, h02, w_ih2, w_hh2, w_out2 = make_case(k2, batch=256, seq=4, input_dim=4,
                                              hidden=32, num_layers=2, zero_h0=False)
    out2, hn2 = meta_optimizer_rnn_forward(x2, h02, w_ih2, w_hh2, w_out2, b_tile=128)
    out2 = jax.block_until_ready(out2)
    hn2 = jax.block_until_ready(hn2)
    out2_ref, hn2_ref = forward_reference(x2, h02, w_ih2, w_hh2, w_out2)
    assert out2.shape == out2_ref.shape, (out2.shape, out2_ref.shape)
    assert jnp.allclose(out2, out2_ref, atol=1e-4, rtol=1e-4)
    assert jnp.allclose(hn2, hn2_ref, atol=1e-4, rtol=1e-4)

    # Case 3: the module's real meta_update usage pattern — inputs are
    # (n_params, 1, 1) normalized gradients, reset_lstm gives 1 layer, zero h0.
    # n_params=300 exercises auto padding (300 -> 512) + even grid of 2.
    x3, h03, w_ih3, w_hh3, w_out3 = make_case(k3, batch=300, seq=1, input_dim=1,
                                              hidden=32, num_layers=1, zero_h0=True)
    out3, hn3 = meta_optimizer_rnn_forward(x3, h03, w_ih3, w_hh3, w_out3)
    out3 = jax.block_until_ready(out3)
    hn3 = jax.block_until_ready(hn3)
    out3_ref, hn3_ref = forward_reference(x3, h03, w_ih3, w_hh3, w_out3)
    assert out3.shape == out3_ref.shape, (out3.shape, out3_ref.shape)
    assert jnp.allclose(out3, out3_ref, atol=1e-4, rtol=1e-4)
    assert jnp.allclose(hn3, hn3_ref, atol=1e-4, rtol=1e-4)

    # Same case through the lane-dense persistent-state path (self.h0 kept as
    # (L, hidden, n_params) between calls — no per-call state transposes).
    h03_t = jnp.transpose(h03, (0, 2, 1))
    out3t, hn3t = meta_optimizer_rnn_forward(x3, h03_t, w_ih3, w_hh3, w_out3,
                                             transposed_state=True)
    out3t = jax.block_until_ready(out3t)
    hn3t = jax.block_until_ready(hn3t)
    assert jnp.allclose(out3t, out3_ref, atol=1e-4, rtol=1e-4)
    assert jnp.allclose(jnp.transpose(hn3t, (0, 2, 1)), hn3_ref, atol=1e-4, rtol=1e-4)

    print("KERNEL_OK")
</pallas_src>

<mosaic_0001>
module attributes {stable_mosaic.version = 11 : i64} {
  func.func @fused_rnn_kernel(%arg0: i32, %arg1: memref<8x4x128xf32, #tpu.memory_space<vmem>>, %arg2: memref<1x32x128xf32, #tpu.memory_space<vmem>>, %arg3: memref<32x4xf32, #tpu.memory_space<vmem>>, %arg4: memref<32x32xf32, #tpu.memory_space<vmem>>, %arg5: memref<1x32xf32, #tpu.memory_space<vmem>>, %arg6: memref<8x128xf32, #tpu.memory_space<vmem>>, %arg7: memref<1x32x128xf32, #tpu.memory_space<vmem>>) attributes {dimension_semantics = [#tpu.dimension_semantics<parallel>], iteration_bounds = array<i64: 1>, scalar_prefetch = 0 : i64, scratch_operands = 0 : i64, tpu.core_type = #tpu.core_type<tc>, window_params = [{transform_indices = @transform_0, window_bounds = array<i64: 8, 4, 128>}, {transform_indices = @transform_1, window_bounds = array<i64: 1, 32, 128>}, {pipeline_mode = #tpu.pipeline_mode<synchronous>, transform_indices = @transform_2, window_bounds = array<i64: 32, 4>}, {pipeline_mode = #tpu.pipeline_mode<synchronous>, transform_indices = @transform_3, window_bounds = array<i64: 32, 32>}, {pipeline_mode = #tpu.pipeline_mode<synchronous>, transform_indices = @transform_4, window_bounds = array<i64: 1, 32>}, {transform_indices = @transform_5, window_bounds = array<i64: 8, 128>}, {transform_indices = @transform_6, window_bounds = array<i64: 1, 32, 128>}]} {
    %c0 = arith.constant 0 : index
    %c0_0 = arith.constant 0 : index
    %0 = vector.load %arg3[%c0, %c0_0] : memref<32x4xf32, #tpu.memory_space<vmem>>, vector<32x4xf32>
    %c0_1 = arith.constant 0 : index
    %c0_2 = arith.constant 0 : index
    %1 = vector.load %arg4[%c0_1, %c0_2] : memref<32x32xf32, #tpu.memory_space<vmem>>, vector<32x32xf32>
    %c0_3 = arith.constant 0 : index
    %c0_4 = arith.constant 0 : index
    %2 = vector.load %arg5[%c0_3, %c0_4] : memref<1x32xf32, #tpu.memory_space<vmem>>, vector<1x32xf32>
    %c0_5 = arith.constant 0 : index
    %c0_6 = arith.constant 0 : index
    %c0_7 = arith.constant 0 : index
    %3 = vector.load %arg2[%c0_5, %c0_6, %c0_7] : memref<1x32x128xf32, #tpu.memory_space<vmem>>, vector<1x32x128xf32>
    %4 = vector.shape_cast %3 : vector<1x32x128xf32> to vector<32x128xf32>
    %c0_8 = arith.constant 0 : index
    %c0_9 = arith.constant 0 : index
    %c0_10 = arith.constant 0 : index
    %5 = vector.load %arg1[%c0_8, %c0_9, %c0_10] : memref<8x4x128xf32, #tpu.memory_space<vmem>>, vector<1x4x128xf32>
    %6 = vector.shape_cast %5 : vector<1x4x128xf32> to vector<4x128xf32>
    %cst = arith.constant dense<0.000000e+00> : vector<32x128xf32>
    %7 = tpu.matmul %0, %6, %cst {dimension_numbers = #tpu.dot_dimension_numbers<[1], [0], [0], [1], [0, 0, 1, 1], [], []>} : vector<32x4xf32>, vector<4x128xf32>, vector<32x128xf32> -> vector<32x128xf32>
    %cst_11 = arith.constant dense<0.000000e+00> : vector<32x128xf32>
    %8 = tpu.matmul %1, %4, %cst_11 {dimension_numbers = #tpu.dot_dimension_numbers<[1], [0], [0], [1], [0, 0, 1, 1], [], []>} : vector<32x32xf32>, vector<32x128xf32>, vector<32x128xf32> -> vector<32x128xf32>
    %9 = arith.addf %7, %8 : vector<32x128xf32>
    %10 = math.tanh %9 : vector<32x128xf32>
    %cst_12 = arith.constant dense<0.000000e+00> : vector<1x128xf32>
    %11 = tpu.matmul %2, %10, %cst_12 {dimension_numbers = #tpu.dot_dimension_numbers<[1], [0], [0], [1], [0, 0, 1, 1], [], []>} : vector<1x32xf32>, vector<32x128xf32>, vector<1x128xf32> -> vector<1x128xf32>
    %c0_13 = arith.constant 0 : index
    %c0_14 = arith.constant 0 : index
    %12 = vector.load %arg6[%c0_13, %c0_14] : memref<8x128xf32, #tpu.memory_space<vmem>>, vector<1x128xf32>
    tpu.vector_store %arg6[%c0_13, %c0_14], %11 {strides = array<i32>} : memref<8x128xf32, #tpu.memory_space<vmem>>, vector<1x128xf32>,
    %c1 = arith.constant 1 : index
    %c0_15 = arith.constant 0 : index
    %c0_16 = arith.constant 0 : index
    %13 = vector.load %arg1[%c1, %c0_15, %c0_16] : memref<8x4x128xf32, #tpu.memory_space<vmem>>, vector<1x4x128xf32>
    %14 = vector.shape_cast %13 : vector<1x4x128xf32> to vector<4x128xf32>
    %cst_17 = arith.constant dense<0.000000e+00> : vector<32x128xf32>
    %15 = tpu.matmul %0, %14, %cst_17 {dimension_numbers = #tpu.dot_dimension_numbers<[1], [0], [0], [1], [0, 0, 1, 1], [], []>} : vector<32x4xf32>, vector<4x128xf32>, vector<32x128xf32> -> vector<32x128xf32>
    %cst_18 = arith.constant dense<0.000000e+00> : vector<32x128xf32>
    %16 = tpu.matmul %1, %10, %cst_18 {dimension_numbers = #tpu.dot_dimension_numbers<[1], [0], [0], [1], [0, 0, 1, 1], [], []>} : vector<32x32xf32>, vector<32x128xf32>, vector<32x128xf32> -> vector<32x128xf32>
    %17 = arith.addf %15, %16 : vector<32x128xf32>
    %18 = math.tanh %17 : vector<32x128xf32>
    %cst_19 = arith.constant dense<0.000000e+00> : vector<1x128xf32>
    %19 = tpu.matmul %2, %18, %cst_19 {dimension_numbers = #tpu.dot_dimension_numbers<[1], [0], [0], [1], [0, 0, 1, 1], [], []>} : vector<1x32xf32>, vector<32x128xf32>, vector<1x128xf32> -> vector<1x128xf32>
    %c1_20 = arith.constant 1 : index
    %c0_21 = arith.constant 0 : index
    %20 = vector.load %arg6[%c1_20, %c0_21] : memref<8x128xf32, #tpu.memory_space<vmem>>, vector<1x128xf32>
    tpu.vector_store %arg6[%c1_20, %c0_21], %19 {strides = array<i32>} : memref<8x128xf32, #tpu.memory_space<vmem>>, vector<1x128xf32>,
    %c2 = arith.constant 2 : index
    %c0_22 = arith.constant 0 : index
    %c0_23 = arith.constant 0 : index
    %21 = vector.load %arg1[%c2, %c0_22, %c0_23] : memref<8x4x128xf32, #tpu.memory_space<vmem>>, vector<1x4x128xf32>
    %22 = vector.shape_cast %21 : vector<1x4x128xf32> to vector<4x128xf32>
    %cst_24 = arith.constant dense<0.000000e+00> : vector<32x128xf32>
    %23 = tpu.matmul %0, %22, %cst_24 {dimension_numbers = #tpu.dot_dimension_numbers<[1], [0], [0], [1], [0, 0, 1, 1], [], []>} : vector<32x4xf32>, vector<4x128xf32>, vector<32x128xf32> -> vector<32x128xf32>
    %cst_25 = arith.constant dense<0.000000e+00> : vector<32x128xf32>
    %24 = tpu.matmul %1, %18, %cst_25 {dimension_numbers = #tpu.dot_dimension_numbers<[1], [0], [0], [1], [0, 0, 1, 1], [], []>} : vector<32x32xf32>, vector<32x128xf32>, vector<32x128xf32> -> vector<32x128xf32>
    %25 = arith.addf %23, %24 : vector<32x128xf32>
    %26 = math.tanh %25 : vector<32x128xf32>
    %cst_26 = arith.constant dense<0.000000e+00> : vector<1x128xf32>
    %27 = tpu.matmul %2, %26, %cst_26 {dimension_numbers = #tpu.dot_dimension_numbers<[1], [0], [0], [1], [0, 0, 1, 1], [], []>} : vector<1x32xf32>, vector<32x128xf32>, vector<1x128xf32> -> vector<1x128xf32>
    %c2_27 = arith.constant 2 : index
    %c0_28 = arith.constant 0 : index
    %28 = vector.load %arg6[%c2_27, %c0_28] : memref<8x128xf32, #tpu.memory_space<vmem>>, vector<1x128xf32>
    tpu.vector_store %arg6[%c2_27, %c0_28], %27 {strides = array<i32>} : memref<8x128xf32, #tpu.memory_space<vmem>>, vector<1x128xf32>,
    %c3 = arith.constant 3 : index
    %c0_29 = arith.constant 0 : index
    %c0_30 = arith.constant 0 : index
    %29 = vector.load %arg1[%c3, %c0_29, %c0_30] : memref<8x4x128xf32, #tpu.memory_space<vmem>>, vector<1x4x128xf32>
    %30 = vector.shape_cast %29 : vector<1x4x128xf32> to vector<4x128xf32>
    %cst_31 = arith.constant dense<0.000000e+00> : vector<32x128xf32>
    %31 = tpu.matmul %0, %30, %cst_31 {dimension_numbers = #tpu.dot_dimension_numbers<[1], [0], [0], [1], [0, 0, 1, 1], [], []>} : vector<32x4xf32>, vector<4x128xf32>, vector<32x128xf32> -> vector<32x128xf32>
    %cst_32 = arith.constant dense<0.000000e+00> : vector<32x128xf32>
    %32 = tpu.matmul %1, %26, %cst_32 {dimension_numbers = #tpu.dot_dimension_numbers<[1], [0], [0], [1], [0, 0, 1, 1], [], []>} : vector<32x32xf32>, vector<32x128xf32>, vector<32x128xf32> -> vector<32x128xf32>
    %33 = arith.addf %31, %32 : vector<32x128xf32>
    %34 = math.tanh %33 : vector<32x128xf32>
    %cst_33 = arith.constant dense<0.000000e+00> : vector<1x128xf32>
    %35 = tpu.matmul %2, %34, %cst_33 {dimension_numbers = #tpu.dot_dimension_numbers<[1], [0], [0], [1], [0, 0, 1, 1], [], []>} : vector<1x32xf32>, vector<32x128xf32>, vector<1x128xf32> -> vector<1x128xf32>
    %c3_34 = arith.constant 3 : index
    %c0_35 = arith.constant 0 : index
    %36 = vector.load %arg6[%c3_34, %c0_35] : memref<8x128xf32, #tpu.memory_space<vmem>>, vector<1x128xf32>
    tpu.vector_store %arg6[%c3_34, %c0_35], %35 {strides = array<i32>} : memref<8x128xf32, #tpu.memory_space<vmem>>, vector<1x128xf32>,
    %c4 = arith.constant 4 : index
    %c0_36 = arith.constant 0 : index
    %c0_37 = arith.constant 0 : index
    %37 = vector.load %arg1[%c4, %c0_36, %c0_37] : memref<8x4x128xf32, #tpu.memory_space<vmem>>, vector<1x4x128xf32>
    %38 = vector.shape_cast %37 : vector<1x4x128xf32> to vector<4x128xf32>
    %cst_38 = arith.constant dense<0.000000e+00> : vector<32x128xf32>
    %39 = tpu.matmul %0, %38, %cst_38 {dimension_numbers = #tpu.dot_dimension_numbers<[1], [0], [0], [1], [0, 0, 1, 1], [], []>} : vector<32x4xf32>, vector<4x128xf32>, vector<32x128xf32> -> vector<32x128xf32>
    %cst_39 = arith.constant dense<0.000000e+00> : vector<32x128xf32>
    %40 = tpu.matmul %1, %34, %cst_39 {dimension_numbers = #tpu.dot_dimension_numbers<[1], [0], [0], [1], [0, 0, 1, 1], [], []>} : vector<32x32xf32>, vector<32x128xf32>, vector<32x128xf32> -> vector<32x128xf32>
    %41 = arith.addf %39, %40 : vector<32x128xf32>
    %42 = math.tanh %41 : vector<32x128xf32>
    %cst_40 = arith.constant dense<0.000000e+00> : vector<1x128xf32>
    %43 = tpu.matmul %2, %42, %cst_40 {dimension_numbers = #tpu.dot_dimension_numbers<[1], [0], [0], [1], [0, 0, 1, 1], [], []>} : vector<1x32xf32>, vector<32x128xf32>, vector<1x128xf32> -> vector<1x128xf32>
    %c4_41 = arith.constant 4 : index
    %c0_42 = arith.constant 0 : index
    %44 = vector.load %arg6[%c4_41, %c0_42] : memref<8x128xf32, #tpu.memory_space<vmem>>, vector<1x128xf32>
    tpu.vector_store %arg6[%c4_41, %c0_42], %43 {strides = array<i32>} : memref<8x128xf32, #tpu.memory_space<vmem>>, vector<1x128xf32>,
    %c5 = arith.constant 5 : index
    %c0_43 = arith.constant 0 : index
    %c0_44 = arith.constant 0 : index
    %45 = vector.load %arg1[%c5, %c0_43, %c0_44] : memref<8x4x128xf32, #tpu.memory_space<vmem>>, vector<1x4x128xf32>
    %46 = vector.shape_cast %45 : vector<1x4x128xf32> to vector<4x128xf32>
    %cst_45 = arith.constant dense<0.000000e+00> : vector<32x128xf32>
    %47 = tpu.matmul %0, %46, %cst_45 {dimension_numbers = #tpu.dot_dimension_numbers<[1], [0], [0], [1], [0, 0, 1, 1], [], []>} : vector<32x4xf32>, vector<4x128xf32>, vector<32x128xf32> -> vector<32x128xf32>
    %cst_46 = arith.constant dense<0.000000e+00> : vector<32x128xf32>
    %48 = tpu.matmul %1, %42, %cst_46 {dimension_numbers = #tpu.dot_dimension_numbers<[1], [0], [0], [1], [0, 0, 1, 1], [], []>} : vector<32x32xf32>, vector<32x128xf32>, vector<32x128xf32> -> vector<32x128xf32>
    %49 = arith.addf %47, %48 : vector<32x128xf32>
    %50 = math.tanh %49 : vector<32x128xf32>
    %cst_47 = arith.constant dense<0.000000e+00> : vector<1x128xf32>
    %51 = tpu.matmul %2, %50, %cst_47 {dimension_numbers = #tpu.dot_dimension_numbers<[1], [0], [0], [1], [0, 0, 1, 1], [], []>} : vector<1x32xf32>, vector<32x128xf32>, vector<1x128xf32> -> vector<1x128xf32>
    %c5_48 = arith.constant 5 : index
    %c0_49 = arith.constant 0 : index
    %52 = vector.load %arg6[%c5_48, %c0_49] : memref<8x128xf32, #tpu.memory_space<vmem>>, vector<1x128xf32>
    tpu.vector_store %arg6[%c5_48, %c0_49], %51 {strides = array<i32>} : memref<8x128xf32, #tpu.memory_space<vmem>>, vector<1x128xf32>,
    %c6 = arith.constant 6 : index
    %c0_50 = arith.constant 0 : index
    %c0_51 = arith.constant 0 : index
    %53 = vector.load %arg1[%c6, %c0_50, %c0_51] : memref<8x4x128xf32, #tpu.memory_space<vmem>>, vector<1x4x128xf32>
    %54 = vector.shape_cast %53 : vector<1x4x128xf32> to vector<4x128xf32>
    %cst_52 = arith.constant dense<0.000000e+00> : vector<32x128xf32>
    %55 = tpu.matmul %0, %54, %cst_52 {dimension_numbers = #tpu.dot_dimension_numbers<[1], [0], [0], [1], [0, 0, 1, 1], [], []>} : vector<32x4xf32>, vector<4x128xf32>, vector<32x128xf32> -> vector<32x128xf32>
    %cst_53 = arith.constant dense<0.000000e+00> : vector<32x128xf32>
    %56 = tpu.matmul %1, %50, %cst_53 {dimension_numbers = #tpu.dot_dimension_numbers<[1], [0], [0], [1], [0, 0, 1, 1], [], []>} : vector<32x32xf32>, vector<32x128xf32>, vector<32x128xf32> -> vector<32x128xf32>
    %57 = arith.addf %55, %56 : vector<32x128xf32>
    %58 = math.tanh %57 : vector<32x128xf32>
    %cst_54 = arith.constant dense<0.000000e+00> : vector<1x128xf32>
    %59 = tpu.matmul %2, %58, %cst_54 {dimension_numbers = #tpu.dot_dimension_numbers<[1], [0], [0], [1], [0, 0, 1, 1], [], []>} : vector<1x32xf32>, vector<32x128xf32>, vector<1x128xf32> -> vector<1x128xf32>
    %c6_55 = arith.constant 6 : index
    %c0_56 = arith.constant 0 : index
    %60 = vector.load %arg6[%c6_55, %c0_56] : memref<8x128xf32, #tpu.memory_space<vmem>>, vector<1x128xf32>
    tpu.vector_store %arg6[%c6_55, %c0_56], %59 {strides = array<i32>} : memref<8x128xf32, #tpu.memory_space<vmem>>, vector<1x128xf32>,
    %c7 = arith.constant 7 : index
    %c0_57 = arith.constant 0 : index
    %c0_58 = arith.constant 0 : index
    %61 = vector.load %arg1[%c7, %c0_57, %c0_58] : memref<8x4x128xf32, #tpu.memory_space<vmem>>, vector<1x4x128xf32>
    %62 = vector.shape_cast %61 : vector<1x4x128xf32> to vector<4x128xf32>
    %cst_59 = arith.constant dense<0.000000e+00> : vector<32x128xf32>
    %63 = tpu.matmul %0, %62, %cst_59 {dimension_numbers = #tpu.dot_dimension_numbers<[1], [0], [0], [1], [0, 0, 1, 1], [], []>} : vector<32x4xf32>, vector<4x128xf32>, vector<32x128xf32> -> vector<32x128xf32>
    %cst_60 = arith.constant dense<0.000000e+00> : vector<32x128xf32>
    %64 = tpu.matmul %1, %58, %cst_60 {dimension_numbers = #tpu.dot_dimension_numbers<[1], [0], [0], [1], [0, 0, 1, 1], [], []>} : vector<32x32xf32>, vector<32x128xf32>, vector<32x128xf32> -> vector<32x128xf32>
    %65 = arith.addf %63, %64 : vector<32x128xf32>
    %66 = math.tanh %65 : vector<32x128xf32>
    %cst_61 = arith.constant dense<0.000000e+00> : vector<1x128xf32>
    %67 = tpu.matmul %2, %66, %cst_61 {dimension_numbers = #tpu.dot_dimension_numbers<[1], [0], [0], [1], [0, 0, 1, 1], [], []>} : vector<1x32xf32>, vector<32x128xf32>, vector<1x128xf32> -> vector<1x128xf32>
    %c7_62 = arith.constant 7 : index
    %c0_63 = arith.constant 0 : index
    %68 = vector.load %arg6[%c7_62, %c0_63] : memref<8x128xf32, #tpu.memory_space<vmem>>, vector<1x128xf32>
    tpu.vector_store %arg6[%c7_62, %c0_63], %67 {strides = array<i32>} : memref<8x128xf32, #tpu.memory_space<vmem>>, vector<1x128xf32>,
    %c0_64 = arith.constant 0 : index
    %c0_65 = arith.constant 0 : index
    %c0_66 = arith.constant 0 : index
    %69 = vector.load %arg7[%c0_64, %c0_65, %c0_66] : memref<1x32x128xf32, #tpu.memory_space<vmem>>, vector<1x32x128xf32>
    %70 = vector.shape_cast %69 : vector<1x32x128xf32> to vector<32x128xf32>
    %71 = vector.shape_cast %66 : vector<32x128xf32> to vector<1x32x128xf32>
    tpu.vector_store %arg7[%c0_64, %c0_65, %c0_66], %71 {strides = array<i32>} : memref<1x32x128xf32, #tpu.memory_space<vmem>>, vector<1x32x128xf32>,
    return
  }
  func.func @transform_0(%arg0: i32) -> (i32, i32, i32) {
    %c0_i32 = arith.constant 0 : i32
    %c0_i32_0 = arith.constant 0 : i32
    %c0_i32_1 = arith.constant 0 : i32
    return %c0_i32, %c0_i32_0, %arg0 : i32, i32, i32
  }
  func.func @transform_1(%arg0: i32) -> (i32, i32, i32) {
    %c0_i32 = arith.constant 0 : i32
    %c0_i32_0 = arith.constant 0 : i32
    %c0_i32_1 = arith.constant 0 : i32
    return %c0_i32, %c0_i32_0, %arg0 : i32, i32, i32
  }
  func.func @transform_2(%arg0: i32) -> (i32, i32) {
    %c0_i32 = arith.constant 0 : i32
    %c0_i32_0 = arith.constant 0 : i32
    %c0_i32_1 = arith.constant 0 : i32
    return %c0_i32, %c0_i32_0 : i32, i32
  }
  func.func @transform_3(%arg0: i32) -> (i32, i32) {
    %c0_i32 = arith.constant 0 : i32
    %c0_i32_0 = arith.constant 0 : i32
    %c0_i32_1 = arith.constant 0 : i32
    return %c0_i32, %c0_i32_0 : i32, i32
  }
  func.func @transform_4(%arg0: i32) -> (i32, i32) {
    %c0_i32 = arith.constant 0 : i32
    %c0_i32_0 = arith.constant 0 : i32
    %c0_i32_1 = arith.constant 0 : i32
    return %c0_i32, %c0_i32_0 : i32, i32
  }
  func.func @transform_5(%arg0: i32) -> (i32, i32) {
    %c0_i32 = arith.constant 0 : i32
    %c0_i32_0 = arith.constant 0 : i32
    return %c0_i32, %arg0 : i32, i32
  }
  func.func @transform_6(%arg0: i32) -> (i32, i32, i32) {
    %c0_i32 = arith.constant 0 : i32
    %c0_i32_0 = arith.constant 0 : i32
    %c0_i32_1 = arith.constant 0 : i32
    return %c0_i32, %c0_i32_0, %arg0 : i32, i32, i32
  }
}

</mosaic_0001>

<bundles_post_ra>
// kernel: tpu_custom_call.1
= control target key start
LH: loop header
LB: loop body
LE: loop exit
PB: predicated region body
PF: predicated region fallthrough
CT: control target
= control target key end

     0   :  { %12 = vsyncpa [#allocation3], 0  ;;  %s3114_s0 = inlined_call_operand.vmem [shape: f32[8,4,128], index: 0, kind: input, shape index: {}]   ;;  %s3115_s1 = inlined_call_operand.hbm [shape: f32[1,32,128], index: 1, kind: input, shape index: {}]   ;;  %s3116_s2 = inlined_call_operand.vmem [shape: f32[32,4], index: 2, kind: input, shape index: {}]   ;;  %s3117_s3 = inlined_call_operand.hbm [shape: f32[32,32], index: 3, kind: input, shape index: {}]   ;;  %s3118_s4 = inlined_call_operand.vmem [shape: f32[1,32], index: 4, kind: input, shape index: {}]   ;;  %s3119_s5 = inlined_call_operand.hbm [shape: f32[8,128], index: 5, kind: output, shape index: {0}]   ;;  %s3120_s6 = inlined_call_operand.hbm [shape: f32[1,32,128], index: 6, kind: output, shape index: {1}]  }
   0x1   :  { %13 = vsyncpa [#allocation6], 0 }
   0x2   :  { %14 = vsyncpa [#allocation4], 0 }
   0x3   :  { %15 = vsyncpa [#allocation9], 0  ;;  %s2785_s21 = smov [#allocation2]  }
   0x4   :  { %s23_s22 = sshll.u32 %s2785_s21, 4  ;;  %s24_s22 = int_to_ptr.vmem [resolvable:$true] %s23_s22 }
   0x5   :  { %s2705_s23 = scalar_lea.vmem %s24_s22, 512  ;;  %p2710_p1 = scmp.lt.s32.totalorder %s24_s22, %s24_s22 }
   0x6   :  { %p2706_p0 = scmp.ne.s32.totalorder %s24_s22, %s2705_s23  ;;  %p2711_p2 = scmp.lt.s32.totalorder %s2705_s23, %s2705_s23 }
   0x8   :  { %p2712_p3 = por %p2711_p2, %p2710_p1 }
   0xa   :  { %p2713_p4 = pnand %p2712_p3, %p2706_p0 }
   0xc   :  { %2716 = shalt.err (!%p2713_p4)
}
   0xd   :  { %s2786_s24 = smov 128   ;;  %s2787_s25 = smov 8  }
   0xe   :  { %29 = dma.hbm_to_vmem [thread:$0]  %s3115_s1, 512, %s24_s22, [#allocation3], %s2786_s24, %s2786_s24, %s2787_s25  }
   0xf   :  { %s2788_s28 = smov [#allocation5]  }
  0x10   :  { %s37_s29 = sshll.u32 %s2788_s28, 4  ;;  %s38_s29 = int_to_ptr.vmem [resolvable:$true] %s37_s29 }
  0x11   :  { %s2725_s30 = scalar_lea.vmem %s38_s29, 512  ;;  %p2730_p6 = scmp.lt.s32.totalorder %s38_s29, %s38_s29 }
  0x12   :  { %p2726_p5 = scmp.ne.s32.totalorder %s38_s29, %s2725_s30  ;;  %p2731_p7 = scmp.lt.s32.totalorder %s2725_s30, %s2725_s30 }
  0x14   :  { %p2732_p8 = por %p2731_p7, %p2730_p6 }
  0x16   :  { %p2733_p9 = pnand %p2732_p8, %p2726_p5 }
  0x18   :  { %2736 = shalt.err (!%p2733_p9)
}
  0x19   :  { %43 = dma.hbm_to_vmem [thread:$0]  %s3117_s3, 512, %s38_s29, [#allocation6], %s2786_s24, %s2786_s24, %s2787_s25  }
  0x1a   :  { %2777 = dma.done.wait [#allocation3], 512  }
  0x1b   :  { %2778 = vsyncadd [#allocation3], 4294966784 }
  0x1c   :  { %2779 = dma.done.wait [#allocation6], 512  }
  0x1d   :  { %2780 = vsyncadd [#allocation6], 4294966784  ;;  %vm177_vm0 = vcmask 1043456   ;;  %v64_v0 = vld [vmem:[#allocation2 + $0x18] sm:$0xff]  ;;  %v63_v1 = vld [vmem:[#allocation2 + $0x10] sm:$0xff]  ;;  %vm164_vm1 = vcmask 31744  }
  0x1e   :  { %2361 = vmatprep.subr.mxu0 %v64_v0  ;;  %v65_v2 = vld [vmem:[%s3114_s0] sm:$0xf]  ;;  %v62_v4 = vld [vmem:[#allocation2 + $0x8] sm:$0xff]  ;;  %vm66_vm2 = vcmask 261120   ;;  %v2862_v8 = vld [vmem:[%s3116_s2 + $0x10] sm:$0xff]  ;;  %v2789_v13 = vmov 0.0  }
  0x1f   :  { %v2846_v3 = vld [vmem:[%s3116_s2] sm:$0xff]  ;;  %2362 = vmatpush3.msra.mxu0 %v64_v0  ;;  %2375 = vmatprep.subr.msk.mxu1 %vm177_vm0, %v65_v2  ;;  %v2852_v5 = vld [vmem:[%s3116_s2 + $0x8] sm:$0xff]  ;;  %v2873_v10 = vld [vmem:[%s3116_s2 + $0x18] sm:$0xff]  ;;  %vm2790_vm3 = vmmov 0  }
  0x20   :  { %2363 = vmatprep.subr.mxu0 %v63_v1  ;;  %2376 = vmatpush3.msk.msra.mxu1 %vm177_vm0, %v65_v2  ;;  %v2855_v6 = vld [vmem:[#allocation5] sm:$0xff]  ;;  %v2868_v9 = vld [vmem:[#allocation5 + $0x8] sm:$0xff]  ;;  %v2877_v11 = vld [vmem:[#allocation5 + $0x10] sm:$0xff] }
  0x21   :  { %2364 = vmatpush3.msra.mxu0 %v63_v1  ;;  %2377 = vmatprep.mubr.msk.f32.mxu1 %vm164_vm1, %v2846_v3  ;;  %v61_v7 = vld [vmem:[#allocation2] sm:$0xff]  ;;  %v2885_v12 = vld [vmem:[#allocation5 + $0x18] sm:$0xff]  ;;  %v2151_v50 = vld [vmem:[%s3114_s0 + $0x8] sm:$0xf] }
  0x22   :  { %2365 = vmatprep.subr.mxu0 %v62_v4  ;;  %2378 = vmatmul.mubr.msk.f32.vlgmr.msra.gmra.mxu1 %vm164_vm1, %v2852_v5  ;;  %v2899_v29 = vld [vmem:[%s3118_s4] sm:$0x1]  ;;  %v2140_v31 = vld [vmem:[%s3114_s0 + $0x4] sm:$0xf] }
  0x23   :  { %2366 = vmatpush3.msra.mxu0 %v62_v4  ;;  %2369 = vmatprep.mubr.msk.f32.mxu0 %vm66_vm2, %v2855_v6 }
  0x24   :  { %2367 = vmatprep.subr.mxu0 %v61_v7  ;;  %2380 = vmatprep.mubr.msk.f32.mxu1 %vm164_vm1, %v2862_v8 }
  0x25   :  { %2368 = vmatpush3.msra.mxu0 %v61_v7  ;;  %2383 = vmatprep.subr.mxu1 %v2789_v13 }
  0x26   :  { %2370 = vmatmul.mubr.msk.f32.vlgmr.msra.gmra.mxu0 %vm66_vm2, %v2868_v9  ;;  %2381 = vmatmul.mubr.msk.f32.gmra.mxu1 %vm164_vm1, %v2873_v10 }
  0x27   :  { %2372 = vmatprep.mubr.msk.f32.mxu0 %vm66_vm2, %v2877_v11  ;;  %2391 = vmatprep.mubr.msk.f32.mxu1 %vm2790_vm3, %v2789_v13 }
  0x2a   :  { %2373 = vmatmul.mubr.msk.f32.gmra.mxu0 %vm66_vm2, %v2885_v12 }
  0x2b   :  { %2402 = vmatprep.mubr.msk.f32.mxu0 %vm66_vm2, %v2855_v6 }
  0xe2   :  { %v2379_v14 = vpop.f32.mrf.mxu1 }
  0xe4   :  { %v247_v15 = vpop.f32.mrf.mxu1 }
  0xe6   :  { %v2371_v16 = vpop.f32.mrf.mxu0  ;;  %v2382_v18 = vpop.f32.mrf.mxu1 }
  0xe7   :  { %v253_v23 = vadd.f32 %v2379_v14, %v2371_v16  ;;  %v2162_v14 = vld [vmem:[%s3114_s0 + $0xc] sm:$0xf] }
  0xe8   :  { %v145_v17 = vpop.f32.mrf.mxu0  ;;  %v257_v21 = vpop.f32.mrf.mxu1 }
  0xe9   :  { %v248_v25 = vadd.f32 %v247_v15, %v145_v17 }
  0xea   :  { %v2374_v19 = vpop.f32.mrf.mxu0 }
  0xeb   :  { %v263_v20 = vadd.f32 %v2382_v18, %v2374_v19 }
  0xec   :  { %v155_v22 = vpop.f32.mrf.mxu0 }
  0xed   :  { %2633 = vtanh.f32 %v263_v20  ;;  %v258_v24 = vadd.f32 %v257_v21, %v155_v22 }
  0xef   :  { %2635 = vtanh.f32 %v258_v24 }
  0xf0   :  { %2637 = vtanh.f32 %v253_v23 }
  0xf1   :  { %2639 = vtanh.f32 %v248_v25 }
  0xfa   :  { %v2634_v26 = vpop.eup %2633 }
  0xfb   :  { %2384 = vmatpush3.msra.mxu1 %v2634_v26  ;;  %2394 = vmatprep.subr.mxu0 %v2634_v26 }
  0xfc   :  { %v2636_v27 = vpop.eup %2635  ;;  %2385 = vmatprep.subr.mxu1 %v2789_v13  ;;  %2395 = vmatpush3.msra.mxu0 %v2634_v26 }
  0xfd   :  { %2386 = vmatpush3.msra.mxu1 %v2636_v27  ;;  %2396 = vmatprep.subr.mxu0 %v2636_v27  ;;  %v2638_v28 = vpop.eup %2637 }
  0xfe   :  { %2387 = vmatprep.subr.mxu1 %v2789_v13  ;;  %2397 = vmatpush3.msra.mxu0 %v2636_v27  ;;  %v2640_v30 = vpop.eup %2639 }
  0xff   :  { %2388 = vmatpush3.msra.mxu1 %v2638_v28  ;;  %2398 = vmatprep.subr.mxu0 %v2638_v28 }
 0x100   :  { %2389 = vmatprep.subr.mxu1 %v2789_v13  ;;  %2399 = vmatpush3.msra.mxu0 %v2638_v28 }
 0x101   :  { %2390 = vmatpush3.msra.mxu1 %v2640_v30  ;;  %2400 = vmatprep.subr.mxu0 %v2640_v30 }
 0x102   :  { %2392 = vmatmul.mubr.msk.f32.vlgmr.msra.gmra.mxu1 %vm66_vm2, %v2899_v29  ;;  %2401 = vmatpush3.msra.mxu0 %v2640_v30 }
 0x103   :  { %2408 = vmatprep.subr.msk.mxu1 %vm177_vm0, %v2140_v31  ;;  %2403 = vmatmul.mubr.msk.f32.vlgmr.msra.gmra.mxu0 %vm66_vm2, %v2868_v9 }
 0x104   :  { %2409 = vmatpush3.msk.msra.mxu1 %vm177_vm0, %v2140_v31  ;;  %2410 = vmatprep.mubr.msk.f32.mxu1 %vm164_vm1, %v2846_v3 }
 0x105   :  { %2405 = vmatprep.mubr.msk.f32.mxu0 %vm66_vm2, %v2877_v11  ;;  %2416 = vmatprep.subr.mxu1 %v2789_v13 }
 0x106   :  { %2411 = vmatmul.mubr.msk.f32.vlgmr.msra.gmra.mxu1 %vm164_vm1, %v2852_v5 }
 0x107   :  { %2406 = vmatmul.mubr.msk.f32.gmra.mxu0 %vm66_vm2, %v2885_v12  ;;  %2413 = vmatprep.mubr.msk.f32.mxu1 %vm164_vm1, %v2862_v8 }
 0x108   :  { %2435 = vmatprep.mubr.msk.f32.mxu0 %vm66_vm2, %v2855_v6 }
 0x10a   :  { %2414 = vmatmul.mubr.msk.f32.gmra.mxu1 %vm164_vm1, %v2873_v10 }
 0x10b   :  { %2424 = vmatprep.mubr.msk.f32.mxu1 %vm2790_vm3, %v2789_v13 }
 0x1c2   :  { %v339_v32 = vpop.f32.mrf.mxu1 }
 0x1c3   :  { %343 = vst [vmem:[#allocation7] sm:$0x1] %v339_v32  ;;  %v2404_v33 = vpop.f32.mrf.mxu0 }
 0x1c4   :  { %v2393_v34 = vpop.f32.mrf.mxu1 }
 0x1c5   :  { %v412_v35 = vpop.f32.mrf.mxu0  ;;  %v2173_v34 = vld [vmem:[%s3114_s0 + $0x10] sm:$0xf] }
 0x1c6   :  { %v2412_v36 = vpop.f32.mrf.mxu1 }
 0x1c7   :  { %v2407_v37 = vpop.f32.mrf.mxu0  ;;  %v506_v43 = vadd.f32 %v2412_v36, %v2404_v33 }
 0x1c8   :  { %v500_v38 = vpop.f32.mrf.mxu1 }
 0x1c9   :  { %v422_v41 = vpop.f32.mrf.mxu0  ;;  %v501_v45 = vadd.f32 %v500_v38, %v412_v35 }
 0x1ca   :  { %v2415_v39 = vpop.f32.mrf.mxu1 }
 0x1cb   :  { %v516_v40 = vadd.f32 %v2415_v39, %v2407_v37 }
 0x1cc   :  { %v510_v42 = vpop.f32.mrf.mxu1 }
 0x1cd   :  { %2641 = vtanh.f32 %v516_v40  ;;  %v511_v44 = vadd.f32 %v510_v42, %v422_v41 }
 0x1cf   :  { %2643 = vtanh.f32 %v511_v44 }
 0x1d0   :  { %2645 = vtanh.f32 %v506_v43 }
 0x1d1   :  { %2647 = vtanh.f32 %v501_v45 }
 0x1da   :  { %v2642_v46 = vpop.eup %2641 }
 0x1db   :  { %2417 = vmatpush3.msra.mxu1 %v2642_v46  ;;  %2427 = vmatprep.subr.mxu0 %v2642_v46 }
 0x1dc   :  { %v2644_v47 = vpop.eup %2643  ;;  %2418 = vmatprep.subr.mxu1 %v2789_v13  ;;  %2428 = vmatpush3.msra.mxu0 %v2642_v46 }
 0x1dd   :  { %2419 = vmatpush3.msra.mxu1 %v2644_v47  ;;  %2429 = vmatprep.subr.mxu0 %v2644_v47  ;;  %v2646_v48 = vpop.eup %2645 }
 0x1de   :  { %2420 = vmatprep.subr.mxu1 %v2789_v13  ;;  %2430 = vmatpush3.msra.mxu0 %v2644_v47  ;;  %v2648_v49 = vpop.eup %2647 }
 0x1df   :  { %2421 = vmatpush3.msra.mxu1 %v2646_v48  ;;  %2431 = vmatprep.subr.mxu0 %v2646_v48 }
 0x1e0   :  { %2422 = vmatprep.subr.mxu1 %v2789_v13  ;;  %2432 = vmatpush3.msra.mxu0 %v2646_v48 }
 0x1e1   :  { %2423 = vmatpush3.msra.mxu1 %v2648_v49  ;;  %2433 = vmatprep.subr.mxu0 %v2648_v49 }
 0x1e2   :  { %2425 = vmatmul.mubr.msk.f32.vlgmr.msra.gmra.mxu1 %vm66_vm2, %v2899_v29  ;;  %2434 = vmatpush3.msra.mxu0 %v2648_v49 }
 0x1e3   :  { %2441 = vmatprep.subr.msk.mxu1 %vm177_vm0, %v2151_v50  ;;  %2436 = vmatmul.mubr.msk.f32.vlgmr.msra.gmra.mxu0 %vm66_vm2, %v2868_v9 }
 0x1e4   :  { %2442 = vmatpush3.msk.msra.mxu1 %vm177_vm0, %v2151_v50  ;;  %2443 = vmatprep.mubr.msk.f32.mxu1 %vm164_vm1, %v2846_v3 }
 0x1e5   :  { %2438 = vmatprep.mubr.msk.f32.mxu0 %vm66_vm2, %v2877_v11  ;;  %2449 = vmatprep.subr.mxu0 %v2789_v13 }
 0x1e6   :  { %2444 = vmatmul.mubr.msk.f32.vlgmr.msra.gmra.mxu1 %vm164_vm1, %v2852_v5 }
 0x1e7   :  { %2439 = vmatmul.mubr.msk.f32.gmra.mxu0 %vm66_vm2, %v2885_v12  ;;  %2446 = vmatprep.mubr.msk.f32.mxu1 %vm164_vm1, %v2862_v8 }
 0x1e8   :  { %2457 = vmatprep.mubr.msk.f32.mxu0 %vm2790_vm3, %v2789_v13 }
 0x1ea   :  { %2447 = vmatmul.mubr.msk.f32.gmra.mxu1 %vm164_vm1, %v2873_v10 }
 0x1eb   :  { %2468 = vmatprep.mubr.msk.f32.mxu1 %vm66_vm2, %v2855_v6 }
 0x2a2   :  { %v589_v51 = vpop.f32.mrf.mxu1 }
 0x2a3   :  { %593 = vst [vmem:[#allocation7 + $0x1] sm:$0x1] %v589_v51  ;;  %v2437_v52 = vpop.f32.mrf.mxu0 }
 0x2a4   :  { %v2426_v53 = vpop.f32.mrf.mxu1 }
 0x2a5   :  { %v662_v54 = vpop.f32.mrf.mxu0  ;;  %v2184_v53 = vld [vmem:[%s3114_s0 + $0x14] sm:$0xf] }
 0x2a6   :  { %v2445_v55 = vpop.f32.mrf.mxu1 }
 0x2a7   :  { %v2440_v56 = vpop.f32.mrf.mxu0  ;;  %v756_v62 = vadd.f32 %v2445_v55, %v2437_v52 }
 0x2a8   :  { %v750_v57 = vpop.f32.mrf.mxu1 }
 0x2a9   :  { %v672_v60 = vpop.f32.mrf.mxu0  ;;  %v751_v0 = vadd.f32 %v750_v57, %v662_v54 }
 0x2aa   :  { %v2448_v58 = vpop.f32.mrf.mxu1 }
 0x2ab   :  { %v766_v59 = vadd.f32 %v2448_v58, %v2440_v56 }
 0x2ac   :  { %v760_v61 = vpop.f32.mrf.mxu1 }
 0x2ad   :  { %2649 = vtanh.f32 %v766_v59  ;;  %v761_v63 = vadd.f32 %v760_v61, %v672_v60 }
 0x2af   :  { %2651 = vtanh.f32 %v761_v63 }
 0x2b0   :  { %2653 = vtanh.f32 %v756_v62 }
 0x2b1   :  { %2655 = vtanh.f32 %v751_v0 }
 0x2ba   :  { %v2650_v1 = vpop.eup %2649 }
 0x2bb   :  { %2450 = vmatpush3.msra.mxu0 %v2650_v1  ;;  %2460 = vmatprep.subr.mxu1 %v2650_v1 }
 0x2bc   :  { %v2652_v2 = vpop.eup %2651  ;;  %2451 = vmatprep.subr.mxu0 %v2789_v13  ;;  %2461 = vmatpush3.msra.mxu1 %v2650_v1 }
 0x2bd   :  { %2452 = vmatpush3.msra.mxu0 %v2652_v2  ;;  %2462 = vmatprep.subr.mxu1 %v2652_v2  ;;  %v2654_v4 = vpop.eup %2653 }
 0x2be   :  { %2453 = vmatprep.subr.mxu0 %v2789_v13  ;;  %2463 = vmatpush3.msra.mxu1 %v2652_v2  ;;  %v2656_v7 = vpop.eup %2655 }
 0x2bf   :  { %2454 = vmatpush3.msra.mxu0 %v2654_v4  ;;  %2464 = vmatprep.subr.mxu1 %v2654_v4 }
 0x2c0   :  { %2455 = vmatprep.subr.mxu0 %v2789_v13  ;;  %2465 = vmatpush3.msra.mxu1 %v2654_v4 }
 0x2c1   :  { %2456 = vmatpush3.msra.mxu0 %v2656_v7  ;;  %2466 = vmatprep.subr.mxu1 %v2656_v7 }
 0x2c2   :  { %2458 = vmatmul.mubr.msk.f32.vlgmr.msra.gmra.mxu0 %vm66_vm2, %v2899_v29  ;;  %2467 = vmatpush3.msra.mxu1 %v2656_v7 }
 0x2c3   :  { %2474 = vmatprep.subr.msk.mxu0 %vm177_vm0, %v2162_v14  ;;  %2469 = vmatmul.mubr.msk.f32.vlgmr.msra.gmra.mxu1 %vm66_vm2, %v2868_v9 }
 0x2c4   :  { %2475 = vmatpush3.msk.msra.mxu0 %vm177_vm0, %v2162_v14  ;;  %2476 = vmatprep.mubr.msk.f32.mxu0 %vm164_vm1, %v2846_v3 }
 0x2c5   :  { %2471 = vmatprep.mubr.msk.f32.mxu1 %vm66_vm2, %v2877_v11  ;;  %2482 = vmatprep.subr.mxu1 %v2789_v13 }
 0x2c6   :  { %2477 = vmatmul.mubr.msk.f32.vlgmr.msra.gmra.mxu0 %vm164_vm1, %v2852_v5 }
 0x2c7   :  { %2472 = vmatmul.mubr.msk.f32.gmra.mxu1 %vm66_vm2, %v2885_v12  ;;  %2479 = vmatprep.mubr.msk.f32.mxu0 %vm164_vm1, %v2862_v8 }
 0x2c8   :  { %2490 = vmatprep.mubr.msk.f32.mxu1 %vm2790_vm3, %v2789_v13 }
 0x2ca   :  { %2480 = vmatmul.mubr.msk.f32.gmra.mxu0 %vm164_vm1, %v2873_v10 }
 0x2cb   :  { %2501 = vmatprep.mubr.msk.f32.mxu0 %vm66_vm2, %v2855_v6 }
 0x382   :  { %v839_v15 = vpop.f32.mrf.mxu0 }
 0x383   :  { %843 = vst [vmem:[#allocation7 + $0x2] sm:$0x1] %v839_v15  ;;  %v2470_v16 = vpop.f32.mrf.mxu1 }
 0x384   :  { %v2459_v17 = vpop.f32.mrf.mxu0 }
 0x385   :  { %v912_v18 = vpop.f32.mrf.mxu1  ;;  %v2195_v17 = vld [vmem:[%s3114_s0 + $0x18] sm:$0xf] }
 0x386   :  { %v2478_v19 = vpop.f32.mrf.mxu0 }
 0x387   :  { %v2473_v20 = vpop.f32.mrf.mxu1  ;;  %v1006_v26 = vadd.f32 %v2478_v19, %v2470_v16 }
 0x388   :  { %v1000_v21 = vpop.f32.mrf.mxu0 }
 0x389   :  { %v922_v24 = vpop.f32.mrf.mxu1  ;;  %v1001_v28 = vadd.f32 %v1000_v21, %v912_v18 }
 0x38a   :  { %v2481_v22 = vpop.f32.mrf.mxu0 }
 0x38b   :  { %v1016_v23 = vadd.f32 %v2481_v22, %v2473_v20 }
 0x38c   :  { %v1010_v25 = vpop.f32.mrf.mxu0 }
 0x38d   :  { %2657 = vtanh.f32 %v1016_v23  ;;  %v1011_v27 = vadd.f32 %v1010_v25, %v922_v24 }
 0x38f   :  { %2659 = vtanh.f32 %v1011_v27 }
 0x390   :  { %2661 = vtanh.f32 %v1006_v26 }
 0x391   :  { %2663 = vtanh.f32 %v1001_v28 }
 0x39a   :  { %v2658_v30 = vpop.eup %2657 }
 0x39b   :  { %2483 = vmatpush3.msra.mxu1 %v2658_v30  ;;  %2493 = vmatprep.subr.mxu0 %v2658_v30 }
 0x39c   :  { %v2660_v31 = vpop.eup %2659  ;;  %2484 = vmatprep.subr.mxu1 %v2789_v13  ;;  %2494 = vmatpush3.msra.mxu0 %v2658_v30 }
 0x39d   :  { %2485 = vmatpush3.msra.mxu1 %v2660_v31  ;;  %2495 = vmatprep.subr.mxu0 %v2660_v31  ;;  %v2662_v32 = vpop.eup %2661 }
 0x39e   :  { %2486 = vmatprep.subr.mxu1 %v2789_v13  ;;  %2496 = vmatpush3.msra.mxu0 %v2660_v31  ;;  %v2664_v33 = vpop.eup %2663 }
 0x39f   :  { %2487 = vmatpush3.msra.mxu1 %v2662_v32  ;;  %2497 = vmatprep.subr.mxu0 %v2662_v32 }
 0x3a0   :  { %2488 = vmatprep.subr.mxu1 %v2789_v13  ;;  %2498 = vmatpush3.msra.mxu0 %v2662_v32 }
 0x3a1   :  { %2489 = vmatpush3.msra.mxu1 %v2664_v33  ;;  %2499 = vmatprep.subr.mxu0 %v2664_v33 }
 0x3a2   :  { %2491 = vmatmul.mubr.msk.f32.vlgmr.msra.gmra.mxu1 %vm66_vm2, %v2899_v29  ;;  %2500 = vmatpush3.msra.mxu0 %v2664_v33 }
 0x3a3   :  { %2507 = vmatprep.subr.msk.mxu1 %vm177_vm0, %v2173_v34  ;;  %2502 = vmatmul.mubr.msk.f32.vlgmr.msra.gmra.mxu0 %vm66_vm2, %v2868_v9 }
 0x3a4   :  { %2508 = vmatpush3.msk.msra.mxu1 %vm177_vm0, %v2173_v34  ;;  %2509 = vmatprep.mubr.msk.f32.mxu1 %vm164_vm1, %v2846_v3 }
 0x3a5   :  { %2504 = vmatprep.mubr.msk.f32.mxu0 %vm66_vm2, %v2877_v11  ;;  %2515 = vmatprep.subr.mxu0 %v2789_v13 }
 0x3a6   :  { %2510 = vmatmul.mubr.msk.f32.vlgmr.msra.gmra.mxu1 %vm164_vm1, %v2852_v5 }
 0x3a7   :  { %2505 = vmatmul.mubr.msk.f32.gmra.mxu0 %vm66_vm2, %v2885_v12  ;;  %2512 = vmatprep.mubr.msk.f32.mxu1 %vm164_vm1, %v2862_v8 }
 0x3a8   :  { %2523 = vmatprep.mubr.msk.f32.mxu0 %vm2790_vm3, %v2789_v13 }
 0x3aa   :  { %2513 = vmatmul.mubr.msk.f32.gmra.mxu1 %vm164_vm1, %v2873_v10 }
 0x3ab   :  { %2534 = vmatprep.mubr.msk.f32.mxu1 %vm66_vm2, %v2855_v6 }
 0x462   :  { %v1089_v35 = vpop.f32.mrf.mxu1 }
 0x463   :  { %1093 = vst [vmem:[#allocation7 + $0x3] sm:$0x1] %v1089_v35  ;;  %v2503_v36 = vpop.f32.mrf.mxu0 }
 0x464   :  { %v2492_v37 = vpop.f32.mrf.mxu1 }
 0x465   :  { %v1162_v38 = vpop.f32.mrf.mxu0 }
 0x466   :  { %v2511_v39 = vpop.f32.mrf.mxu1 }
 0x467   :  { %v2506_v40 = vpop.f32.mrf.mxu0  ;;  %v1256_v46 = vadd.f32 %v2511_v39, %v2503_v36  ;;  %v2206_v36 = vld [vmem:[%s3114_s0 + $0x1c] sm:$0xf]  ;;  %s2791_s0 = smov [#allocation8]  }
 0x468   :  { %v1250_v41 = vpop.f32.mrf.mxu1  ;;  %s2113_s1 = sshll.u32 %s2791_s0, 4  ;;  %s2114_s1 = int_to_ptr.vmem [resolvable:$true] %s2113_s1 }
 0x469   :  { %v1172_v44 = vpop.f32.mrf.mxu0  ;;  %v1251_v48 = vadd.f32 %v1250_v41, %v1162_v38  ;;  %s2737_s9 = scalar_lea.vmem %s2114_s1, 512  ;;  %p2742_p11 = scmp.lt.s32.totalorder %s2114_s1, %s2114_s1 }
 0x46a   :  { %v2514_v42 = vpop.f32.mrf.mxu1  ;;  %p2738_p10 = scmp.ne.s32.totalorder %s2114_s1, %s2737_s9  ;;  %p2743_p12 = scmp.lt.s32.totalorder %s2737_s9, %s2737_s9 }
 0x46b   :  { %v1266_v43 = vadd.f32 %v2514_v42, %v2506_v40 }
 0x46c   :  { %v1260_v45 = vpop.f32.mrf.mxu1  ;;  %p2744_p13 = por %p2743_p12, %p2742_p11 }
 0x46d   :  { %2665 = vtanh.f32 %v1266_v43  ;;  %v1261_v47 = vadd.f32 %v1260_v45, %v1172_v44 }
 0x46e   :  { %p2745_p0 = pnand %p2744_p13, %p2738_p10 }
 0x46f   :  { %2667 = vtanh.f32 %v1261_v47 }
 0x470   :  { %2669 = vtanh.f32 %v1256_v46 }
 0x471   :  { %2671 = vtanh.f32 %v1251_v48 }
 0x47a   :  { %v2666_v49 = vpop.eup %2665 }
 0x47b   :  { %2516 = vmatpush3.msra.mxu0 %v2666_v49  ;;  %2526 = vmatprep.subr.mxu1 %v2666_v49 }
 0x47c   :  { %v2668_v50 = vpop.eup %2667  ;;  %2517 = vmatprep.subr.mxu0 %v2789_v13  ;;  %2527 = vmatpush3.msra.mxu1 %v2666_v49 }
 0x47d   :  { %2518 = vmatpush3.msra.mxu0 %v2668_v50  ;;  %2528 = vmatprep.subr.mxu1 %v2668_v50  ;;  %v2670_v51 = vpop.eup %2669 }
 0x47e   :  { %2519 = vmatprep.subr.mxu0 %v2789_v13  ;;  %2529 = vmatpush3.msra.mxu1 %v2668_v50  ;;  %v2672_v52 = vpop.eup %2671 }
 0x47f   :  { %2520 = vmatpush3.msra.mxu0 %v2670_v51  ;;  %2530 = vmatprep.subr.mxu1 %v2670_v51 }
 0x480   :  { %2521 = vmatprep.subr.mxu0 %v2789_v13  ;;  %2531 = vmatpush3.msra.mxu1 %v2670_v51 }
 0x481   :  { %2522 = vmatpush3.msra.mxu0 %v2672_v52  ;;  %2532 = vmatprep.subr.mxu1 %v2672_v52 }
 0x482   :  { %2524 = vmatmul.mubr.msk.f32.vlgmr.msra.gmra.mxu0 %vm66_vm2, %v2899_v29  ;;  %2533 = vmatpush3.msra.mxu1 %v2672_v52 }
 0x483   :  { %2540 = vmatprep.subr.msk.mxu0 %vm177_vm0, %v2184_v53  ;;  %2535 = vmatmul.mubr.msk.f32.vlgmr.msra.gmra.mxu1 %vm66_vm2, %v2868_v9 }
 0x484   :  { %2541 = vmatpush3.msk.msra.mxu0 %vm177_vm0, %v2184_v53  ;;  %2542 = vmatprep.mubr.msk.f32.mxu0 %vm164_vm1, %v2846_v3 }
 0x485   :  { %2537 = vmatprep.mubr.msk.f32.mxu1 %vm66_vm2, %v2877_v11  ;;  %2548 = vmatprep.subr.mxu1 %v2789_v13 }
 0x486   :  { %2543 = vmatmul.mubr.msk.f32.vlgmr.msra.gmra.mxu0 %vm164_vm1, %v2852_v5 }
 0x487   :  { %2538 = vmatmul.mubr.msk.f32.gmra.mxu1 %vm66_vm2, %v2885_v12  ;;  %2545 = vmatprep.mubr.msk.f32.mxu0 %vm164_vm1, %v2862_v8 }
 0x488   :  { %2556 = vmatprep.mubr.msk.f32.mxu1 %vm2790_vm3, %v2789_v13 }
 0x48a   :  { %2546 = vmatmul.mubr.msk.f32.gmra.mxu0 %vm164_vm1, %v2873_v10 }
 0x48b   :  { %2567 = vmatprep.mubr.msk.f32.mxu0 %vm66_vm2, %v2855_v6 }
 0x542   :  { %v1339_v54 = vpop.f32.mrf.mxu0 }
 0x543   :  { %1343 = vst [vmem:[#allocation7 + $0x4] sm:$0x1] %v1339_v54  ;;  %v2536_v55 = vpop.f32.mrf.mxu1 }
 0x544   :  { %v2525_v56 = vpop.f32.mrf.mxu0 }
 0x545   :  { %v1412_v57 = vpop.f32.mrf.mxu1 }
 0x546   :  { %v2544_v58 = vpop.f32.mrf.mxu0 }
 0x547   :  { %v2539_v59 = vpop.f32.mrf.mxu1  ;;  %v1506_v1 = vadd.f32 %v2544_v58, %v2536_v55 }
 0x548   :  { %v1500_v60 = vpop.f32.mrf.mxu0 }
 0x549   :  { %v1422_v63 = vpop.f32.mrf.mxu1  ;;  %v1501_v4 = vadd.f32 %v1500_v60, %v1412_v57 }
 0x54a   :  { %v2547_v61 = vpop.f32.mrf.mxu0 }
 0x54b   :  { %v1516_v62 = vadd.f32 %v2547_v61, %v2539_v59 }
 0x54c   :  { %v1510_v0 = vpop.f32.mrf.mxu0 }
 0x54d   :  { %2673 = vtanh.f32 %v1516_v62  ;;  %v1511_v2 = vadd.f32 %v1510_v0, %v1422_v63 }
 0x54f   :  { %2675 = vtanh.f32 %v1511_v2 }
 0x550   :  { %2677 = vtanh.f32 %v1506_v1 }
 0x551   :  { %2679 = vtanh.f32 %v1501_v4 }
 0x55a   :  { %v2674_v7 = vpop.eup %2673 }
 0x55b   :  { %2549 = vmatpush3.msra.mxu1 %v2674_v7  ;;  %2559 = vmatprep.subr.mxu0 %v2674_v7 }
 0x55c   :  { %v2676_v14 = vpop.eup %2675  ;;  %2550 = vmatprep.subr.mxu1 %v2789_v13  ;;  %2560 = vmatpush3.msra.mxu0 %v2674_v7 }
 0x55d   :  { %2551 = vmatpush3.msra.mxu1 %v2676_v14  ;;  %2561 = vmatprep.subr.mxu0 %v2676_v14  ;;  %v2678_v15 = vpop.eup %2677 }
 0x55e   :  { %2552 = vmatprep.subr.mxu1 %v2789_v13  ;;  %2562 = vmatpush3.msra.mxu0 %v2676_v14  ;;  %v2680_v16 = vpop.eup %2679 }
 0x55f   :  { %2553 = vmatpush3.msra.mxu1 %v2678_v15  ;;  %2563 = vmatprep.subr.mxu0 %v2678_v15 }
 0x560   :  { %2554 = vmatprep.subr.mxu1 %v2789_v13  ;;  %2564 = vmatpush3.msra.mxu0 %v2678_v15 }
 0x561   :  { %2555 = vmatpush3.msra.mxu1 %v2680_v16  ;;  %2565 = vmatprep.subr.mxu0 %v2680_v16 }
 0x562   :  { %2557 = vmatmul.mubr.msk.f32.vlgmr.msra.gmra.mxu1 %vm66_vm2, %v2899_v29  ;;  %2566 = vmatpush3.msra.mxu0 %v2680_v16 }
 0x563   :  { %2573 = vmatprep.subr.msk.mxu1 %vm177_vm0, %v2195_v17  ;;  %2568 = vmatmul.mubr.msk.f32.vlgmr.msra.gmra.mxu0 %vm66_vm2, %v2868_v9 }
 0x564   :  { %2574 = vmatpush3.msk.msra.mxu1 %vm177_vm0, %v2195_v17  ;;  %2575 = vmatprep.mubr.msk.f32.mxu1 %vm164_vm1, %v2846_v3 }
 0x565   :  { %2570 = vmatprep.mubr.msk.f32.mxu0 %vm66_vm2, %v2877_v11  ;;  %2581 = vmatprep.subr.mxu0 %v2789_v13 }
 0x566   :  { %2576 = vmatmul.mubr.msk.f32.vlgmr.msra.gmra.mxu1 %vm164_vm1, %v2852_v5 }
 0x567   :  { %2571 = vmatmul.mubr.msk.f32.gmra.mxu0 %vm66_vm2, %v2885_v12  ;;  %2578 = vmatprep.mubr.msk.f32.mxu1 %vm164_vm1, %v2862_v8 }
 0x568   :  { %2589 = vmatprep.mubr.msk.f32.mxu0 %vm2790_vm3, %v2789_v13 }
 0x56a   :  { %2579 = vmatmul.mubr.msk.f32.gmra.mxu1 %vm164_vm1, %v2873_v10 }
 0x56b   :  { %2600 = vmatprep.mubr.msk.f32.mxu1 %vm66_vm2, %v2855_v6 }
 0x622   :  { %v1589_v18 = vpop.f32.mrf.mxu1 }
 0x623   :  { %1593 = vst [vmem:[#allocation7 + $0x5] sm:$0x1] %v1589_v18  ;;  %v2569_v19 = vpop.f32.mrf.mxu0 }
 0x624   :  { %v2558_v20 = vpop.f32.mrf.mxu1 }
 0x625   :  { %v1662_v21 = vpop.f32.mrf.mxu0 }
 0x626   :  { %v2577_v22 = vpop.f32.mrf.mxu1 }
 0x627   :  { %v2572_v23 = vpop.f32.mrf.mxu0  ;;  %v1756_v30 = vadd.f32 %v2577_v22, %v2569_v19 }
 0x628   :  { %v1750_v24 = vpop.f32.mrf.mxu1 }
 0x629   :  { %v1672_v27 = vpop.f32.mrf.mxu0  ;;  %v1751_v32 = vadd.f32 %v1750_v24, %v1662_v21 }
 0x62a   :  { %v2580_v25 = vpop.f32.mrf.mxu1 }
 0x62b   :  { %v1766_v26 = vadd.f32 %v2580_v25, %v2572_v23 }
 0x62c   :  { %v1760_v28 = vpop.f32.mrf.mxu1 }
 0x62d   :  { %2681 = vtanh.f32 %v1766_v26  ;;  %v1761_v31 = vadd.f32 %v1760_v28, %v1672_v27 }
 0x62f   :  { %2683 = vtanh.f32 %v1761_v31 }
 0x630   :  { %2685 = vtanh.f32 %v1756_v30 }
 0x631   :  { %2687 = vtanh.f32 %v1751_v32 }
 0x63a   :  { %v2682_v6 = vpop.eup %2681 }
 0x63b   :  { %2582 = vmatpush3.msra.mxu0 %v2682_v6  ;;  %2592 = vmatprep.subr.mxu1 %v2682_v6 }
 0x63c   :  { %v2684_v33 = vpop.eup %2683  ;;  %2583 = vmatprep.subr.mxu0 %v2789_v13  ;;  %2593 = vmatpush3.msra.mxu1 %v2682_v6 }
 0x63d   :  { %2584 = vmatpush3.msra.mxu0 %v2684_v33  ;;  %2594 = vmatprep.subr.mxu1 %v2684_v33  ;;  %v2686_v34 = vpop.eup %2685 }
 0x63e   :  { %2585 = vmatprep.subr.mxu0 %v2789_v13  ;;  %2595 = vmatpush3.msra.mxu1 %v2684_v33  ;;  %v2688_v35 = vpop.eup %2687 }
 0x63f   :  { %2586 = vmatpush3.msra.mxu0 %v2686_v34  ;;  %2596 = vmatprep.subr.mxu1 %v2686_v34 }
 0x640   :  { %2587 = vmatprep.subr.mxu0 %v2789_v13  ;;  %2597 = vmatpush3.msra.mxu1 %v2686_v34 }
 0x641   :  { %2588 = vmatpush3.msra.mxu0 %v2688_v35  ;;  %2598 = vmatprep.subr.mxu1 %v2688_v35 }
 0x642   :  { %2590 = vmatmul.mubr.msk.f32.vlgmr.msra.gmra.mxu0 %vm66_vm2, %v2899_v29  ;;  %2599 = vmatpush3.msra.mxu1 %v2688_v35 }
 0x643   :  { %2606 = vmatprep.subr.msk.mxu0 %vm177_vm0, %v2206_v36  ;;  %2601 = vmatmul.mubr.msk.f32.vlgmr.msra.gmra.mxu1 %vm66_vm2, %v2868_v9 }
 0x644   :  { %2607 = vmatpush3.msk.msra.mxu0 %vm177_vm0, %v2206_v36  ;;  %2608 = vmatprep.mubr.msk.f32.mxu0 %vm164_vm1, %v2846_v3 }
 0x645   :  { %2603 = vmatprep.mubr.msk.f32.mxu1 %vm66_vm2, %v2877_v11  ;;  %2614 = vmatprep.subr.mxu1 %v2789_v13 }
 0x646   :  { %2609 = vmatmul.mubr.msk.f32.vlgmr.msra.gmra.mxu0 %vm164_vm1, %v2852_v5 }
 0x647   :  { %2604 = vmatmul.mubr.msk.f32.gmra.mxu1 %vm66_vm2, %v2885_v12  ;;  %2611 = vmatprep.mubr.msk.f32.mxu0 %vm164_vm1, %v2862_v8 }
 0x648   :  { %2622 = vmatprep.mubr.msk.f32.mxu1 %vm2790_vm3, %v2789_v13 }
 0x64a   :  { %2612 = vmatmul.mubr.msk.f32.gmra.mxu0 %vm164_vm1, %v2873_v10 }
 0x702   :  { %v1839_v3 = vpop.f32.mrf.mxu0 }
 0x703   :  { %1843 = vst [vmem:[#allocation7 + $0x6] sm:$0x1] %v1839_v3  ;;  %v2602_v9 = vpop.f32.mrf.mxu1 }
 0x704   :  { %v2591_v11 = vpop.f32.mrf.mxu0 }
 0x705   :  { %v1912_v37 = vpop.f32.mrf.mxu1 }
 0x706   :  { %v2610_v38 = vpop.f32.mrf.mxu0 }
 0x707   :  { %v2006_v39 = vadd.f32 %v2610_v38, %v2602_v9  ;;  %v2605_v5 = vpop.f32.mrf.mxu1 }
 0x708   :  { %v2000_v40 = vpop.f32.mrf.mxu0 }
 0x709   :  { %2689 = vtanh.f32 %v2006_v39  ;;  %v2001_v12 = vadd.f32 %v2000_v40, %v1912_v37  ;;  %v1922_v42 = vpop.f32.mrf.mxu1 }
 0x70a   :  { %v2613_v41 = vpop.f32.mrf.mxu0 }
 0x70b   :  { %2691 = vtanh.f32 %v2001_v12  ;;  %v2016_v8 = vadd.f32 %v2613_v41, %v2605_v5 }
 0x70c   :  { %v2010_v43 = vpop.f32.mrf.mxu0 }
 0x70d   :  { %2693 = vtanh.f32 %v2016_v8  ;;  %v2011_v44 = vadd.f32 %v2010_v43, %v1922_v42 }
 0x70f   :  { %2695 = vtanh.f32 %v2011_v44 }
 0x716   :  { %v2690_v10 = vpop.eup %2689 }
 0x717   :  { %2095 = vst [vmem:[#allocation8 + $0x8] sm:$0xff] %v2690_v10 }
 0x718   :  { %v2692_v45 = vpop.eup %2691 }
 0x719   :  { %2094 = vst [vmem:[#allocation8] sm:$0xff] %v2692_v45 }
 0x71a   :  { %v2694_v46 = vpop.eup %2693 }
 0x71b   :  { %2097 = vst [vmem:[#allocation8 + $0x18] sm:$0xff] %v2694_v46  ;;  %2615 = vmatpush3.msra.mxu1 %v2694_v46 }
 0x71c   :  { %v2696_v47 = vpop.eup %2695  ;;  %2616 = vmatprep.subr.mxu1 %v2789_v13 }
 0x71d   :  { %2096 = vst [vmem:[#allocation8 + $0x10] sm:$0xff] %v2696_v47  ;;  %2617 = vmatpush3.msra.mxu1 %v2696_v47 }
 0x71e   :  { %2618 = vmatprep.subr.mxu1 %v2789_v13 }
 0x71f   :  { %2619 = vmatpush3.msra.mxu1 %v2690_v10 }
 0x720   :  { %2620 = vmatprep.subr.mxu1 %v2789_v13 }
 0x721   :  { %2621 = vmatpush3.msra.mxu1 %v2692_v45 }
 0x722   :  { %2623 = vmatmul.mubr.msk.f32.vlgmr.msra.gmra.mxu1 %vm66_vm2, %v2899_v29 }
 0x723   :  { %2748 = shalt.err (!%p2745_p0)
}
 0x724   :  { %2119 = dma.vmem_to_hbm [thread:$0]  %s2114_s1, 512, %s3120_s6, [#allocation9], %s2786_s24, %s2786_s24, %s2787_s25  }
 0x725   :  { %s2792_s3 = smov [#allocation7]  }
 0x726   :  { %s2104_s12 = sshll.u32 %s2792_s3, 4  ;;  %s2105_s12 = int_to_ptr.vmem [resolvable:$true] %s2104_s12 }
 0x727   :  { %s2757_s13 = scalar_lea.vmem %s2105_s12, 128  ;;  %p2762_p2 = scmp.lt.s32.totalorder %s2105_s12, %s2105_s12 }
 0x728   :  { %p2758_p1 = scmp.ne.s32.totalorder %s2105_s12, %s2757_s13  ;;  %p2763_p3 = scmp.lt.s32.totalorder %s2757_s13, %s2757_s13 }
 0x72a   :  { %p2764_p4 = por %p2763_p3, %p2762_p2 }
 0x72c   :  { %p2765_p5 = pnand %p2764_p4, %p2758_p1 }
 0x7e2   :  { %v2089_v13 = vpop.f32.mrf.mxu1 }
 0x7e3   :  { %2093 = vst [vmem:[#allocation7 + $0x7] sm:$0x1] %v2089_v13 }
 0x7e4   :  { %v2624_v29 = vpop.f32.mrf.mxu1 }
 0x7e5   :  { %2768 = shalt.err (!%p2765_p5)
}
 0x7e6   :  { %2107 = dma.vmem_to_hbm [thread:$0]  %s2105_s12, 128, %s3119_s5, [#allocation4]  }
 0x7e7   :  { %2781 = dma.done.wait [#allocation4], 128  }
 0x7e8   :  { %2782 = vsyncadd [#allocation4], 4294967168 }
 0x7e9   :  { %2783 = dma.done.wait [#allocation9], 512  }
 0x7ea   :  { %2784 = vsyncadd [#allocation9], 4294966784 }
 0x7eb   :  { %2126 = vsyncpa [#allocation3], 1 }
 0x7ec   :  { %2127 = vsyncpa [#allocation6], 1 }
 0x7ed   :  { %2128 = vsyncpa [#allocation4], 1 }
 0x7ee   :  { %2129 = vsyncpa [#allocation9], 1 }

</bundles_post_ra>
